<compile_context>
chip_gen: v7x
topology: tpu7x:2x2x1
jax: 0.10.0
libtpu: 0.0.40
codegen_flags: <defaults>
</compile_context>

<pallas_src>
import functools
import math

import jax
import jax.numpy as jnp
from jax.experimental import pallas as pl
from jax.experimental.pallas import tpu as pltpu


def _round_up(x: int, m: int) -> int:
    return (x + m - 1) // m * m


# --------------------------------------------------------------------------
# Fused kernel: one M-tile per grid step, all layers computed back-to-back.
# --------------------------------------------------------------------------
def _mlp_fused_kernel(*refs, num_layers: int, matmul_dtype):
    """refs = (x_ref, w0, b0, w1, b1, ..., o_ref).

    x_ref : [TM, K0]      caller dtype (cast to matmul_dtype in-kernel)
    w_i   : [Ki, Ni]      bf16 (hidden dims lane-padded, first K / last N true)
    b_i   : [1, Ni]       f32
    o_ref : [TM, N_out]   f32 (unpadded output)
    Intermediates stay in VMEM/vregs as bf16 between layers; only the final
    tile is stored to HBM.
    """
    x_ref = refs[0]
    o_ref = refs[1 + 2 * num_layers]

    h = x_ref[...].astype(matmul_dtype)                # bf16 [TM, K0]
    for i in range(num_layers):
        w = refs[1 + 2 * i][...]                       # bf16 [Ki, Ni]
        b = refs[2 + 2 * i][...]                       # f32  [1, Ni]
        acc = jnp.dot(h, w, preferred_element_type=jnp.float32) + b
        if i < num_layers - 1:
            h = jnp.maximum(acc, 0.0).astype(matmul_dtype)   # bf16 carry
        else:
            h = acc                                          # f32 output
    o_ref[...] = h.astype(o_ref.dtype)


# --------------------------------------------------------------------------
# Parameter construction (mirrors MLP_Head.__init__) and kernel-layout prep.
# --------------------------------------------------------------------------
def init_mlp_head_params(key, input_dim, hidden_dim, output_dim, num_layers):
    """Deterministic init mirroring MLP_Head layer shapes.

    PyTorch nn.Linear(n, k) has weight [k, n], bias [k]. We return weights
    pre-transposed as [n, k] (x @ W layout) in f32.
    """
    h = [hidden_dim] * (num_layers - 1)
    in_dims = [input_dim] + h
    out_dims = h + [output_dim]
    params = []
    for n, k in zip(in_dims, out_dims):
        key, wk, bk = jax.random.split(key, 3)
        bound = 1.0 / jnp.sqrt(jnp.float32(n))
        w = jax.random.uniform(wk, (k, n), jnp.float32, -bound, bound)  # torch layout
        b = jax.random.uniform(bk, (k,), jnp.float32, -bound, bound)
        params.append((w.T, b))  # kernel layout [n, k]
    return params


def prepare_mlp_head_params(params, matmul_dtype=jnp.bfloat16, lane_align=128):
    """Zero-pad only HIDDEN feature dims to a lane multiple; weights -> bf16.

    Layer 0 keeps its true K (x HBM read not inflated); the last layer keeps
    its true N (output HBM write not inflated). Zero padding is exact.
    """
    num_layers = len(params)
    prepared = []
    prev_np = None
    for i, (w, b) in enumerate(params):            # w: [K, N] f32, b: [N] f32
        K, N = w.shape
        Kp = K if i == 0 else prev_np              # match previous padded output
        Np = N if i == num_layers - 1 else _round_up(N, lane_align)
        w_p = jnp.zeros((Kp, Np), matmul_dtype).at[:K, :N].set(
            w.astype(matmul_dtype))
        b_p = jnp.zeros((1, Np), jnp.float32).at[0, :N].set(
            b.astype(jnp.float32))
        prepared.append((w_p, b_p))
        prev_np = Np
    return prepared


# --------------------------------------------------------------------------
# Forward pass: one fused pallas_call over an M-tiled grid.
# --------------------------------------------------------------------------
def mlp_head_forward(x, prepared, output_dim, *, tm=1024,
                     tile_budget_bytes=32 * 1024 * 1024,
                     vmem_limit_cap_bytes=48 * 1024 * 1024):
    """x: [..., input_dim] -> [..., output_dim]; matches MLP_Head.forward."""
    lead = x.shape[:-1]
    K = x.shape[-1]
    M = math.prod(lead) if lead else 1
    num_layers = len(prepared)
    matmul_dtype = prepared[0][0].dtype

    x2 = x.reshape(M, K)                   # native dtype, no pad, no copy
    Nlast = prepared[-1][0].shape[1]
    assert Nlast == output_dim

    x_itemsize = jnp.dtype(x2.dtype).itemsize
    weight_bytes = sum(w.size * w.dtype.itemsize + b.size * b.dtype.itemsize
                       for w, b in prepared)
    max_np = max(w.shape[1] for w, _ in prepared)

    def tiles_bytes(tm_):
        b = 2 * tm_ * K * x_itemsize       # double-buffered x tile
        b += 2 * tm_ * Nlast * 4           # double-buffered out tile (f32)
        b += tm_ * max_np * (2 + 4)        # bf16 h + f32 acc intermediates
        return b + weight_bytes            # weights/biases single-buffered

    # ---- pick TM: big tiles, >=2 grid steps when there's enough work ----
    TM = min(tm, M)
    if TM < M:
        TM = _round_up(TM, 8)
    elif M >= 512:
        TM = _round_up(pl.cdiv(M, 2), 8)   # let v7x megacore shard 2 steps
    while TM > 8 and tiles_bytes(TM) > tile_budget_bytes:
        TM = max(8, _round_up(TM // 2, 8))
    # TODO(synk): add an N/K grid axis (weight tiling) fallback when the
    # resident bf16 weights alone exceed the v7x 64 MiB VMEM budget.

    grid = (pl.cdiv(M, TM),)

    in_specs = [pl.BlockSpec((TM, K), lambda i: (i, 0))]
    flat_params = []
    flops = 0
    for w_p, b_p in prepared:
        Kp, Np = w_p.shape
        in_specs.append(pl.BlockSpec((Kp, Np), lambda i: (0, 0),
                                     pipeline_mode=pl.Buffered(1)))
        in_specs.append(pl.BlockSpec((1, Np), lambda i: (0, 0),
                                     pipeline_mode=pl.Buffered(1)))
        flat_params.extend([w_p, b_p])
        flops += 2 * M * Kp * Np

    bytes_accessed = M * K * x_itemsize + M * Nlast * 4 + weight_bytes
    needed = tiles_bytes(TM)
    vmem_limit = int(min(vmem_limit_cap_bytes,
                         max(32 * 1024 * 1024,
                             needed + needed // 2 + (2 << 20))))

    kernel = functools.partial(
        _mlp_fused_kernel, num_layers=num_layers, matmul_dtype=matmul_dtype)

    out = pl.pallas_call(
        kernel,
        out_shape=jax.ShapeDtypeStruct((M, Nlast), jnp.float32),
        grid_spec=pltpu.PrefetchScalarGridSpec(
            num_scalar_prefetch=0,
            grid=grid,
            in_specs=in_specs,
            out_specs=pl.BlockSpec((TM, Nlast), lambda i: (i, 0)),
        ),
        compiler_params=pltpu.CompilerParams(
            dimension_semantics=("parallel",),
            vmem_limit_bytes=vmem_limit,
        ),
        cost_estimate=pl.CostEstimate(
            flops=flops, transcendentals=0, bytes_accessed=bytes_accessed),
    )(x2, *flat_params)

    return out.reshape(*lead, output_dim)


# --------------------------------------------------------------------------
# Pure-JAX reference (same bf16-in / f32-accumulate matmul semantics).
# --------------------------------------------------------------------------
def mlp_head_ref(x, params, matmul_dtype=jnp.bfloat16):
    num_layers = len(params)
    for i, (w, b) in enumerate(params):
        x = jnp.dot(x.astype(matmul_dtype), w.astype(matmul_dtype),
                    preferred_element_type=jnp.float32) + b
        if i < num_layers - 1:
            x = jnp.maximum(x, 0.0)
    return x


if __name__ == "__main__":
    input_dim, hidden_dim, output_dim, num_layers = 32, 64, 16, 3
    batch, seq = 2, 8

    key = jax.random.PRNGKey(0)
    key, xk = jax.random.split(key)
    x = jax.random.normal(xk, (batch, seq, input_dim), jnp.float32)

    params = init_mlp_head_params(key, input_dim, hidden_dim, output_dim,
                                  num_layers)
    prepared = prepare_mlp_head_params(params)

    out = mlp_head_forward(x, prepared, output_dim)
    out = jax.block_until_ready(out)

    ref = mlp_head_ref(x, params)
    assert out.shape == (batch, seq, output_dim), out.shape
    max_err = float(jnp.max(jnp.abs(out - ref)))
    assert jnp.allclose(out, ref, atol=1e-3, rtol=1e-3), f"mismatch: {max_err}"

    print("KERNEL_OK")
</pallas_src>

<mosaic_0001>
module attributes {stable_mosaic.version = 11 : i64} {
  func.func @_mlp_fused_kernel(%arg0: i32, %arg1: memref<16x32xf32, #tpu.memory_space<vmem>>, %arg2: memref<32x128xbf16, #tpu.memory_space<vmem>>, %arg3: memref<1x128xf32, #tpu.memory_space<vmem>>, %arg4: memref<128x128xbf16, #tpu.memory_space<vmem>>, %arg5: memref<1x128xf32, #tpu.memory_space<vmem>>, %arg6: memref<128x16xbf16, #tpu.memory_space<vmem>>, %arg7: memref<1x16xf32, #tpu.memory_space<vmem>>, %arg8: memref<16x16xf32, #tpu.memory_space<vmem>>) attributes {dimension_semantics = [#tpu.dimension_semantics<parallel>], iteration_bounds = array<i64: 1>, scalar_prefetch = 0 : i64, scratch_operands = 0 : i64, tpu.core_type = #tpu.core_type<tc>, window_params = [{transform_indices = @transform_0, window_bounds = array<i64: 16, 32>}, {pipeline_mode = #tpu.pipeline_mode<synchronous>, transform_indices = @transform_1, window_bounds = array<i64: 32, 128>}, {pipeline_mode = #tpu.pipeline_mode<synchronous>, transform_indices = @transform_2, window_bounds = array<i64: 1, 128>}, {pipeline_mode = #tpu.pipeline_mode<synchronous>, transform_indices = @transform_3, window_bounds = array<i64: 128, 128>}, {pipeline_mode = #tpu.pipeline_mode<synchronous>, transform_indices = @transform_4, window_bounds = array<i64: 1, 128>}, {pipeline_mode = #tpu.pipeline_mode<synchronous>, transform_indices = @transform_5, window_bounds = array<i64: 128, 16>}, {pipeline_mode = #tpu.pipeline_mode<synchronous>, transform_indices = @transform_6, window_bounds = array<i64: 1, 16>}, {transform_indices = @transform_7, window_bounds = array<i64: 16, 16>}]} {
    %c0 = arith.constant 0 : index
    %c0_0 = arith.constant 0 : index
    %0 = vector.load %arg1[%c0, %c0_0] : memref<16x32xf32, #tpu.memory_space<vmem>>, vector<16x32xf32>
    %1 = arith.truncf %0 : vector<16x32xf32> to vector<16x32xbf16>
    %c0_1 = arith.constant 0 : index
    %c0_2 = arith.constant 0 : index
    %2 = vector.load %arg2[%c0_1, %c0_2] : memref<32x128xbf16, #tpu.memory_space<vmem>>, vector<32x128xbf16>
    %c0_3 = arith.constant 0 : index
    %c0_4 = arith.constant 0 : index
    %3 = vector.load %arg3[%c0_3, %c0_4] : memref<1x128xf32, #tpu.memory_space<vmem>>, vector<1x128xf32>
    %cst = arith.constant dense<0.000000e+00> : vector<16x128xf32>
    %4 = tpu.matmul %1, %2, %cst {dimension_numbers = #tpu.dot_dimension_numbers<[1], [0], [0], [1], [0, 0, 1, 1], [], []>} : vector<16x32xbf16>, vector<32x128xbf16>, vector<16x128xf32> -> vector<16x128xf32>
    %5 = vector.broadcast %3 : vector<1x128xf32> to vector<16x128xf32>
    %6 = arith.addf %4, %5 : vector<16x128xf32>
    %cst_5 = arith.constant 0.000000e+00 : f32
    %7 = vector.broadcast %cst_5 : f32 to vector<16x128xf32>
    %8 = arith.maximumf %6, %7 : vector<16x128xf32>
    %9 = arith.truncf %8 : vector<16x128xf32> to vector<16x128xbf16>
    %c0_6 = arith.constant 0 : index
    %c0_7 = arith.constant 0 : index
    %10 = vector.load %arg4[%c0_6, %c0_7] : memref<128x128xbf16, #tpu.memory_space<vmem>>, vector<128x128xbf16>
    %c0_8 = arith.constant 0 : index
    %c0_9 = arith.constant 0 : index
    %11 = vector.load %arg5[%c0_8, %c0_9] : memref<1x128xf32, #tpu.memory_space<vmem>>, vector<1x128xf32>
    %cst_10 = arith.constant dense<0.000000e+00> : vector<16x128xf32>
    %12 = tpu.matmul %9, %10, %cst_10 {dimension_numbers = #tpu.dot_dimension_numbers<[1], [0], [0], [1], [0, 0, 1, 1], [], []>} : vector<16x128xbf16>, vector<128x128xbf16>, vector<16x128xf32> -> vector<16x128xf32>
    %13 = vector.broadcast %11 : vector<1x128xf32> to vector<16x128xf32>
    %14 = arith.addf %12, %13 : vector<16x128xf32>
    %cst_11 = arith.constant 0.000000e+00 : f32
    %15 = vector.broadcast %cst_11 : f32 to vector<16x128xf32>
    %16 = arith.maximumf %14, %15 : vector<16x128xf32>
    %17 = arith.truncf %16 : vector<16x128xf32> to vector<16x128xbf16>
    %c0_12 = arith.constant 0 : index
    %c0_13 = arith.constant 0 : index
    %18 = vector.load %arg6[%c0_12, %c0_13] : memref<128x16xbf16, #tpu.memory_space<vmem>>, vector<128x16xbf16>
    %c0_14 = arith.constant 0 : index
    %c0_15 = arith.constant 0 : index
    %19 = vector.load %arg7[%c0_14, %c0_15] : memref<1x16xf32, #tpu.memory_space<vmem>>, vector<1x16xf32>
    %cst_16 = arith.constant dense<0.000000e+00> : vector<16x16xf32>
    %20 = tpu.matmul %17, %18, %cst_16 {dimension_numbers = #tpu.dot_dimension_numbers<[1], [0], [0], [1], [0, 0, 1, 1], [], []>} : vector<16x128xbf16>, vector<128x16xbf16>, vector<16x16xf32> -> vector<16x16xf32>
    %21 = vector.broadcast %19 : vector<1x16xf32> to vector<16x16xf32>
    %22 = arith.addf %20, %21 : vector<16x16xf32>
    %c0_17 = arith.constant 0 : index
    %c0_18 = arith.constant 0 : index
    %23 = vector.load %arg8[%c0_17, %c0_18] : memref<16x16xf32, #tpu.memory_space<vmem>>, vector<16x16xf32>
    tpu.vector_store %arg8[%c0_17, %c0_18], %22 {strides = array<i32>} : memref<16x16xf32, #tpu.memory_space<vmem>>, vector<16x16xf32>,
    return
  }
  func.func @transform_0(%arg0: i32) -> (i32, i32) {
    %c0_i32 = arith.constant 0 : i32
    %c0_i32_0 = arith.constant 0 : i32
    return %arg0, %c0_i32 : i32, i32
  }
  func.func @transform_1(%arg0: i32) -> (i32, i32) {
    %c0_i32 = arith.constant 0 : i32
    %c0_i32_0 = arith.constant 0 : i32
    %c0_i32_1 = arith.constant 0 : i32
    return %c0_i32, %c0_i32_0 : i32, i32
  }
  func.func @transform_2(%arg0: i32) -> (i32, i32) {
    %c0_i32 = arith.constant 0 : i32
    %c0_i32_0 = arith.constant 0 : i32
    %c0_i32_1 = arith.constant 0 : i32
    return %c0_i32, %c0_i32_0 : i32, i32
  }
  func.func @transform_3(%arg0: i32) -> (i32, i32) {
    %c0_i32 = arith.constant 0 : i32
    %c0_i32_0 = arith.constant 0 : i32
    %c0_i32_1 = arith.constant 0 : i32
    return %c0_i32, %c0_i32_0 : i32, i32
  }
  func.func @transform_4(%arg0: i32) -> (i32, i32) {
    %c0_i32 = arith.constant 0 : i32
    %c0_i32_0 = arith.constant 0 : i32
    %c0_i32_1 = arith.constant 0 : i32
    return %c0_i32, %c0_i32_0 : i32, i32
  }
  func.func @transform_5(%arg0: i32) -> (i32, i32) {
    %c0_i32 = arith.constant 0 : i32
    %c0_i32_0 = arith.constant 0 : i32
    %c0_i32_1 = arith.constant 0 : i32
    return %c0_i32, %c0_i32_0 : i32, i32
  }
  func.func @transform_6(%arg0: i32) -> (i32, i32) {
    %c0_i32 = arith.constant 0 : i32
    %c0_i32_0 = arith.constant 0 : i32
    %c0_i32_1 = arith.constant 0 : i32
    return %c0_i32, %c0_i32_0 : i32, i32
  }
  func.func @transform_7(%arg0: i32) -> (i32, i32) {
    %c0_i32 = arith.constant 0 : i32
    %c0_i32_0 = arith.constant 0 : i32
    return %arg0, %c0_i32 : i32, i32
  }
}

</mosaic_0001>

<bundles_post_ra>
// kernel: tpu_custom_call.1
= control target key start
LH: loop header
LB: loop body
LE: loop exit
PB: predicated region body
PF: predicated region fallthrough
CT: control target
= control target key end

     0   :  { %12 = vsyncpa [#allocation3], 0  ;;  %s687_s0 = inlined_call_operand.vmem [shape: f32[16,32], index: 0, kind: input, shape index: {}]   ;;  %s688_s1 = inlined_call_operand.hbm [shape: bf16[32,128], index: 1, kind: input, shape index: {}]   ;;  %s689_s2 = inlined_call_operand.vmem [shape: f32[1,128], index: 2, kind: input, shape index: {}]   ;;  %s690_s3 = inlined_call_operand.vmem [shape: bf16[128,128], index: 3, kind: input, shape index: {}]   ;;  %s691_s4 = inlined_call_operand.vmem [shape: f32[1,128], index: 4, kind: input, shape index: {}]   ;;  %s692_s5 = inlined_call_operand.vmem [shape: bf16[128,16], index: 5, kind: input, shape index: {}]   ;;  %s693_s6 = inlined_call_operand.vmem [shape: f32[1,16], index: 6, kind: input, shape index: {}]   ;;  %s694_s7 = inlined_call_operand.hbm [shape: f32[16,16], index: 7, kind: output, shape index: {}]  }
   0x1   :  { %13 = vsyncpa [#allocation4], 0  ;;  %s528_s24 = smov [#allocation2]   ;;  %s480_s28 = scalar_lea.hbm %s688_s1, 256 }
   0x2   :  { %s21_s25 = sshll.u32 %s528_s24, 4  ;;  %p481_p0 = scmp.ne.s32.totalorder %s688_s1, %s480_s28  ;;  %s22_s25 = int_to_ptr.vmem [resolvable:$true] %s21_s25 }
   0x3   :  { %p484_p1 = scmp.lt.u32.totalorder %s480_s28, %s688_s1 }
   0x5   :  { %p486_p2 = pnand %p484_p1, %p481_p0 }
   0x7   :  { %489 = shalt.err (!%p486_p2)
}
   0x8   :  { %s490_s10 = scalar_lea.vmem %s22_s25, 256  ;;  %p495_p4 = scmp.lt.s32.totalorder %s22_s25, %s22_s25 }
   0x9   :  { %p491_p3 = scmp.ne.s32.totalorder %s22_s25, %s490_s10  ;;  %p496_p5 = scmp.lt.s32.totalorder %s490_s10, %s490_s10 }
   0xb   :  { %p497_p6 = por %p496_p5, %p495_p4 }
   0xd   :  { %p498_p7 = pnand %p497_p6, %p491_p3 }
   0xf   :  { %501 = shalt.err (!%p498_p7)
}
  0x10   :  { %s529_s11 = smov 64   ;;  %s530_s12 = smov 4  }
  0x11   :  { %27 = dma.hbm_to_vmem [thread:$0]  %s688_s1, 256, %s22_s25, [#allocation3], %s529_s11, %s529_s11, %s530_s12  }
  0x12   :  { %524 = dma.done.wait [#allocation3], 256  }
  0x13   :  { %525 = vsyncadd [#allocation3], 4294967040  ;;  %v531_v0 = vmov 0.0   ;;  %vm532_vm0 = vmmov 0   ;;  %v462_v1 = vld [vmem:[#allocation2] sm:$0xff]   ;;  %v463_v2 = vld [vmem:[#allocation2 + $0x8] sm:$0xff]  }
  0x14   :  { %406 = vmatprep.subr.bf16.mxu0 %v531_v0  ;;  %410 = vmatprep.mubr.msk.bf16.mxu0 %vm532_vm0, %v531_v0  ;;  %v42_v3 = vld [vmem:[%s687_s0] sm:$0xff]  ;;  %v43_v4 = vld [vmem:[%s687_s0 + $0x8] sm:$0xff]  ;;  %vm68_vm1 = vcmask 261120   ;;  %v466_v8 = vld [vmem:[%s690_s3 + $0x10] sm:$0xff]   ;;  %vm343_vm2 = vcmask 130048  }
  0x15   :  { %414 = vmatprep.subr.bf16.mxu1 %v531_v0  ;;  %430 = vmatprep.mubr.msk.bf16.mxu1 %vm532_vm0, %v531_v0  ;;  %v464_v5 = vld [vmem:[%s690_s3] sm:$0xff]   ;;  %v44_v6 = vpack.c.bf16 %v43_v4, %v42_v3  ;;  %v465_v7 = vld [vmem:[%s690_s3 + $0x8] sm:$0xff]   ;;  %v467_v9 = vld [vmem:[%s690_s3 + $0x18] sm:$0xff]  }
  0x16   :  { %407 = vmatpush3.bf16.msra.mxu0 %v462_v1  ;;  %415 = vmatpush3.bf16.msra.mxu1 %v464_v5  ;;  %v468_v10 = vld [vmem:[%s690_s3 + $0x20] sm:$0xff]   ;;  %v469_v11 = vld [vmem:[%s690_s3 + $0x28] sm:$0xff]   ;;  %v470_v12 = vld [vmem:[%s690_s3 + $0x30] sm:$0xff]  }
  0x17   :  { %408 = vmatprep.subr.bf16.mxu0 %v531_v0  ;;  %416 = vmatprep.subr.bf16.mxu1 %v531_v0  ;;  %v471_v13 = vld [vmem:[%s690_s3 + $0x38] sm:$0xff]   ;;  %v472_v14 = vld [vmem:[%s692_s5] sm:$0xff]   ;;  %v473_v15 = vld [vmem:[%s692_s5 + $0x8] sm:$0xff]  }
  0x18   :  { %v474_v16 = vld [vmem:[%s692_s5 + $0x10] sm:$0xff]   ;;  %v475_v17 = vld [vmem:[%s692_s5 + $0x18] sm:$0xff]   ;;  %v476_v18 = vld [vmem:[%s692_s5 + $0x20] sm:$0xff]  }
  0x19   :  { %v477_v19 = vld [vmem:[%s692_s5 + $0x28] sm:$0xff]   ;;  %v363_v20 = vld [vmem:[%s689_s2] ss:$0 sm:$0xff]  ;;  %v478_v30 = vld [vmem:[%s692_s5 + $0x30] sm:$0xff]  }
  0x1a   :  { %409 = vmatpush3.bf16.msra.mxu0 %v463_v2  ;;  %417 = vmatpush3.bf16.msra.mxu1 %v465_v7  ;;  %v479_v31 = vld [vmem:[%s692_s5 + $0x38] sm:$0xff]   ;;  %v367_v32 = vld [vmem:[%s691_s4] ss:$0 sm:$0xff]  ;;  %s533_s5 = smov [#allocation5]  }
  0x1b   :  { %434 = vmatprep.subr.bf16.mxu0 %v531_v0  ;;  %418 = vmatprep.subr.bf16.mxu1 %v531_v0  ;;  %v376_v42 = vld [vmem:[%s693_s6] ss:$0 sm:$0xff]  ;;  %s351_s28 = sshll.u32 %s533_s5, 4  ;;  %s352_s28 = int_to_ptr.vmem [resolvable:$true] %s351_s28 }
  0x1c   :  { %s502_s4 = scalar_lea.vmem %s352_s28, 256  ;;  %p507_p9 = scmp.lt.s32.totalorder %s352_s28, %s352_s28 }
  0x1d   :  { %411 = vmatmul.mubr.msk.bf16.vlgmr.msra.gmra.mrb[0].mxu0 %vm68_vm1, %v44_v6  ;;  %p503_p8 = scmp.ne.s32.totalorder %s352_s28, %s502_s4  ;;  %p508_p10 = scmp.lt.s32.totalorder %s502_s4, %s502_s4 }
  0x1e   :  { %450 = vmatprep.mubr.msk.bf16.mxu0 %vm532_vm0, %v531_v0  ;;  %419 = vmatpush3.bf16.msra.mxu1 %v466_v8 }
  0x1f   :  { %420 = vmatprep.subr.bf16.mxu1 %v531_v0  ;;  %435 = vmatpush3.bf16.msra.mxu0 %v472_v14  ;;  %p509_p11 = por %p508_p10, %p507_p9 }
  0x20   :  { %436 = vmatprep.subr.bf16.mxu0 %v531_v0 }
  0x21   :  { %p510_p12 = pnand %p509_p11, %p503_p8 }
  0x22   :  { %421 = vmatpush3.bf16.msra.mxu1 %v467_v9 }
  0x23   :  { %422 = vmatprep.subr.bf16.mxu1 %v531_v0  ;;  %437 = vmatpush3.bf16.msra.mxu0 %v473_v15 }
  0x24   :  { %438 = vmatprep.subr.bf16.mxu0 %v531_v0 }
  0x26   :  { %423 = vmatpush3.bf16.msra.mxu1 %v468_v10 }
  0x27   :  { %424 = vmatprep.subr.bf16.mxu1 %v531_v0  ;;  %439 = vmatpush3.bf16.msra.mxu0 %v474_v16 }
  0x28   :  { %440 = vmatprep.subr.bf16.mxu0 %v531_v0 }
  0x2a   :  { %425 = vmatpush3.bf16.msra.mxu1 %v469_v11 }
  0x2b   :  { %426 = vmatprep.subr.bf16.mxu1 %v531_v0  ;;  %441 = vmatpush3.bf16.msra.mxu0 %v475_v17 }
  0x2c   :  { %442 = vmatprep.subr.bf16.mxu0 %v531_v0 }
  0x2e   :  { %427 = vmatpush3.bf16.msra.mxu1 %v470_v12 }
  0x2f   :  { %428 = vmatprep.subr.bf16.mxu1 %v531_v0  ;;  %443 = vmatpush3.bf16.msra.mxu0 %v476_v18 }
  0x30   :  { %444 = vmatprep.subr.bf16.mxu0 %v531_v0 }
  0x32   :  { %429 = vmatpush3.bf16.msra.mxu1 %v471_v13 }
  0x33   :  { %445 = vmatpush3.bf16.msra.mxu0 %v477_v19 }
  0x34   :  { %446 = vmatprep.subr.bf16.mxu0 %v531_v0 }
  0x37   :  { %447 = vmatpush3.bf16.msra.mxu0 %v478_v30 }
  0x38   :  { %448 = vmatprep.subr.bf16.mxu0 %v531_v0 }
  0x3b   :  { %449 = vmatpush3.bf16.msra.mxu0 %v479_v31 }
  0xf0   :  { %v106_v21 = vpop.f32.mrb[0].mxu0 }
  0xf1   :  { %v107_v22 = vadd.f32 %v363_v20, %v106_v21  ;;  %v412_v23 = vpop.f32.mrb[1].mxu0 }
  0xf2   :  { %v109_v24 = vpop.f32.mrb[2].mxu0 }
  0xf3   :  { %v110_v25 = vadd.f32 %v363_v20, %v109_v24  ;;  %v413_v26 = vpop.f32.mrb[3].mxu0  ;;  %v113_v27 = vmax.f32 %v107_v22, 0.0 }
  0xf5   :  { %v114_v28 = vmax.f32 %v110_v25, 0.0 }
  0xf7   :  { %v115_v29 = vpack.c.bf16 %v114_v28, %v113_v27 }
  0xf9   :  { %431 = vmatmul.mubr.bf16.vlgmr.msra.gmra.mrb[0].mxu1 %v115_v29 }
 0x1cc   :  { %v221_v33 = vpop.f32.mrb[0].mxu1 }
 0x1cd   :  { %v222_v34 = vadd.f32 %v367_v32, %v221_v33  ;;  %v432_v35 = vpop.f32.mrb[1].mxu1 }
 0x1ce   :  { %v224_v36 = vpop.f32.mrb[2].mxu1 }
 0x1cf   :  { %v225_v37 = vadd.f32 %v367_v32, %v224_v36  ;;  %v433_v38 = vpop.f32.mrb[3].mxu1  ;;  %v228_v39 = vmax.f32 %v222_v34, 0.0 }
 0x1d1   :  { %v229_v40 = vmax.f32 %v225_v37, 0.0 }
 0x1d3   :  { %v230_v41 = vpack.c.bf16 %v229_v40, %v228_v39 }
 0x1d5   :  { %451 = vmatmul.mubr.bf16.vlgmr.msra.gmra.mrb[4].mxu0 %v230_v41 }
 0x2a8   :  { %v336_v43 = vpop.f32.mrb[4].mxu0 }
 0x2a9   :  { %v337_v44 = vadd.f32 %v376_v42, %v336_v43  ;;  %v452_v45 = vpop.f32.mrb[5].mxu0 }
 0x2aa   :  { %v339_v46 = vpop.f32.mrb[6].mxu0 }
 0x2ab   :  { %344 = vst.msk [vmem:[#allocation5] sm:$0xff] %vm343_vm2, %v337_v44  ;;  %v340_v47 = vadd.f32 %v376_v42, %v339_v46  ;;  %v453_v48 = vpop.f32.mrb[7].mxu0 }
 0x2ad   :  { %345 = vst.msk [vmem:[#allocation5 + $0x8] sm:$0xff] %vm343_vm2, %v340_v47 }
 0x2ae   :  { %513 = shalt.err (!%p510_p12)
}
 0x2af   :  { %s514_s30 = scalar_lea.hbm %s694_s7, 256 }
 0x2b0   :  { %p515_p13 = scmp.ne.s32.totalorder %s694_s7, %s514_s30  ;;  %p518_p0 = scmp.lt.u32.totalorder %s514_s30, %s694_s7 }
 0x2b2   :  { %p520_p1 = pnand %p518_p0, %p515_p13 }
 0x2b4   :  { %523 = shalt.err (!%p520_p1)
}
 0x2b5   :  { %s534_s12 = smov 128   ;;  %s535_s13 = smov 8  }
 0x2b6   :  { %357 = dma.vmem_to_hbm [thread:$0]  %s352_s28, 256, %s694_s7, [#allocation4], %s534_s12, %s534_s12, %s535_s13  }
 0x2b7   :  { %526 = dma.done.wait [#allocation4], 256  }
 0x2b8   :  { %527 = vsyncadd [#allocation4], 4294967040 }
 0x2b9   :  { %361 = vsyncpa [#allocation3], 1 }
 0x2ba   :  { %362 = vsyncpa [#allocation4], 1 }

</bundles_post_ra>
